<compile_context>
chip_gen: v6e
topology: v6e:2x2x1
jax: 0.10.0
libtpu: 0.0.40
codegen_flags: <defaults>
</compile_context>

<pallas_src>
import jax
import jax.numpy as jnp
from jax.experimental import pallas as pl
from jax.experimental.pallas import tpu as pltpu

NUM_CLASSES = 340


def _round_up(x, m):
    return (x + m - 1) // m * m


# ----------------------------------------------------------------------------- kernel

def _fused_forward_kernel(p_ref, wc_ref, bc_ref, w1_ref, b1_ref,
                          w2_ref, b2_ref, wf_ref, bf_ref, o_ref):
    # ---- conv stem (im2col matmul) + ReLU; stays in VMEM/vregs only ----------
    feat = jnp.dot(p_ref[0], wc_ref[...], preferred_element_type=jnp.float32)
    feat = jnp.maximum(feat + bc_ref[...], 0.0)                  # [HW, C_pad]

    # ---- global average pool (shared by SE squeeze and classifier GAP) -------
    pooled = jnp.mean(feat, axis=0, keepdims=True)               # [1, C_pad]

    # ---- SE excitation on the pooled vector -----------------------------------
    h = jnp.dot(pooled, w1_ref[...], preferred_element_type=jnp.float32) + b1_ref[...]
    h = jnp.maximum(h, 0.0)
    s = jax.nn.sigmoid(
        jnp.dot(h, w2_ref[...], preferred_element_type=jnp.float32) + b2_ref[...])

    # SE scale commutes with GAP: mean(f * s, spatial) == mean(f, spatial) * s
    # (padded channels have pooled == 0, so their s = 0.5 contributes nothing)
    logits = jnp.dot(pooled * s, wf_ref[...],
                     preferred_element_type=jnp.float32) + bf_ref[...]
    o_ref[0] = logits                                            # [1, N_pad]


# ----------------------------------------------------------------------------- wrapper

def fused_forward(patches, p):
    """patches: [B, HW, K_pad] f32 (lane-dense). Returns logits [B, N_pad]."""
    B, HW, K_pad = patches.shape
    C_pad = p["conv_w"].shape[1]
    S_pad = p["se_w1"].shape[1]
    N_pad = p["fc_w"].shape[1]

    def full(shape):
        return pl.BlockSpec(shape, lambda b, _s=shape: (0,) * len(_s))

    out = pl.pallas_call(
        _fused_forward_kernel,
        out_shape=jax.ShapeDtypeStruct((B, 1, N_pad), jnp.float32),
        grid=(B,),
        in_specs=[
            pl.BlockSpec((1, HW, K_pad), lambda b: (b, 0, 0)),   # per-batch patches
            full((K_pad, C_pad)), full((1, C_pad)),              # conv w / b
            full((C_pad, S_pad)), full((1, S_pad)),              # se w1 / b1
            full((S_pad, C_pad)), full((1, C_pad)),              # se w2 / b2
            full((C_pad, N_pad)), full((1, N_pad)),              # fc w / b
        ],
        out_specs=pl.BlockSpec((1, 1, N_pad), lambda b: (b, 0, 0)),
        compiler_params=pltpu.CompilerParams(
            dimension_semantics=("parallel",),        # batch split across TCs on v7x
            vmem_limit_bytes=32 * 1024 * 1024,
        ),
    )(patches, p["conv_w"], p["conv_b"], p["se_w1"], p["se_b1"],
      p["se_w2"], p["se_b2"], p["fc_w"], p["fc_b"])
    return out[:, 0, :]


def _im2col_3x3_same(x_nhwc, k_pad):
    """3x3 SAME-conv patches with the K->k_pad zero padding fused into the concat."""
    B, H, W, C = x_nhwc.shape
    xp = jnp.pad(x_nhwc, ((0, 0), (1, 1), (1, 1), (0, 0)))
    cols = [xp[:, di:di + H, dj:dj + W, :] for di in range(3) for dj in range(3)]
    pad_c = k_pad - 9 * C
    if pad_c:
        cols.append(jnp.zeros((B, H, W, pad_c), x_nhwc.dtype))
    return jnp.concatenate(cols, axis=-1).reshape(B, H * W, k_pad)


@jax.jit
def finetune_image_forward(x_nchw, padded_params):
    """Pallas forward pass.  x_nchw: [B, Cin, H, W] (PyTorch convention)."""
    B, Cin, H, W = x_nchw.shape
    x = jnp.transpose(x_nchw, (0, 2, 3, 1)).astype(jnp.float32)      # -> NHWC
    k_pad = padded_params["conv_w"].shape[0]                         # round_up(9*Cin, 128)
    patches = _im2col_3x3_same(x, k_pad)                             # [B, HW, K_pad]
    logits = fused_forward(patches, padded_params)                   # [B, N_pad]
    return logits[:, :NUM_CLASSES]


# ----------------------------------------------------------------------------- reference

def ref_forward(x_nchw, params):
    x = jnp.transpose(x_nchw, (0, 2, 3, 1)).astype(jnp.float32)
    y = jax.lax.conv_general_dilated(
        x, params["conv_w"], (1, 1), "SAME",
        dimension_numbers=("NHWC", "HWIO", "NHWC"))
    y = jnp.maximum(y + params["conv_b"].reshape(1, 1, 1, -1), 0.0)
    B, H, W, C = y.shape
    f = y.reshape(B, H * W, C)
    pooled = f.mean(axis=1)
    h = jnp.maximum(pooled @ params["se_w1"] + params["se_b1"], 0.0)
    s = jax.nn.sigmoid(h @ params["se_w2"] + params["se_b2"])
    f = f * s[:, None, :]                       # full spatial SE scaling (un-fused)
    g = f.mean(axis=1)
    return g @ params["fc_w"] + params["fc_b"]  # [B, NUM_CLASSES]


# ----------------------------------------------------------------------------- params

def make_params(key, cin=3, cstem=32, se_hidden=8):
    k = jax.random.split(key, 8)
    return {
        "conv_w": 0.1 * jax.random.normal(k[0], (3, 3, cin, cstem), jnp.float32),  # HWIO
        "conv_b": 0.1 * jax.random.normal(k[1], (1, cstem), jnp.float32),
        "se_w1":  0.1 * jax.random.normal(k[2], (cstem, se_hidden), jnp.float32),
        "se_b1":  0.1 * jax.random.normal(k[3], (1, se_hidden), jnp.float32),
        "se_w2":  0.1 * jax.random.normal(k[4], (se_hidden, cstem), jnp.float32),
        "se_b2":  jnp.zeros((1, cstem), jnp.float32),
        "fc_w":   0.1 * jax.random.normal(k[5], (cstem, NUM_CLASSES), jnp.float32),
        "fc_b":   0.1 * jax.random.normal(k[6], (1, NUM_CLASSES), jnp.float32),
    }


def pad_params(params):
    """Zero-pad every matmul dim to a multiple of 128 (lane-dense, unmasked stores)."""
    kh, kw, cin, c = params["conv_w"].shape
    k = kh * kw * cin
    se = params["se_w1"].shape[1]
    n = params["fc_w"].shape[1]
    K_pad, C_pad = _round_up(k, 128), _round_up(c, 128)
    S_pad, N_pad = _round_up(se, 128), _round_up(n, 128)
    wc = params["conv_w"].reshape(k, c)
    return {
        "conv_w": jnp.pad(wc, ((0, K_pad - k), (0, C_pad - c))),
        "conv_b": jnp.pad(params["conv_b"], ((0, 0), (0, C_pad - c))),
        "se_w1":  jnp.pad(params["se_w1"], ((0, C_pad - c), (0, S_pad - se))),
        "se_b1":  jnp.pad(params["se_b1"], ((0, 0), (0, S_pad - se))),
        "se_w2":  jnp.pad(params["se_w2"], ((0, S_pad - se), (0, C_pad - c))),
        "se_b2":  jnp.pad(params["se_b2"], ((0, 0), (0, C_pad - c))),
        "fc_w":   jnp.pad(params["fc_w"], ((0, C_pad - c), (0, N_pad - n))),
        "fc_b":   jnp.pad(params["fc_b"], ((0, 0), (0, N_pad - n))),
    }


# ----------------------------------------------------------------------------- main

if __name__ == "__main__":
    key = jax.random.PRNGKey(0)
    k_x, k_p = jax.random.split(key)

    B, Cin, H, W = 2, 3, 16, 16
    x = jax.random.normal(k_x, (B, Cin, H, W), jnp.float32)
    params = make_params(k_p, cin=Cin)
    padded = pad_params(params)          # one-time padding, outside the hot path

    out = finetune_image_forward(x, padded)
    out = jax.block_until_ready(out)

    ref = ref_forward(x, params)
    assert out.shape == (B, NUM_CLASSES), out.shape
    max_err = float(jnp.max(jnp.abs(out - ref)))
    assert jnp.allclose(out, ref, atol=1e-3, rtol=1e-3), max_err

    print("KERNEL_OK")
</pallas_src>

<mosaic_0001>
module attributes {stable_mosaic.version = 11 : i64} {
  func.func @_fused_forward_kernel(%arg0: i32, %arg1: memref<1x256x128xf32, #tpu.memory_space<vmem>>, %arg2: memref<128x128xf32, #tpu.memory_space<vmem>>, %arg3: memref<1x128xf32, #tpu.memory_space<vmem>>, %arg4: memref<128x128xf32, #tpu.memory_space<vmem>>, %arg5: memref<1x128xf32, #tpu.memory_space<vmem>>, %arg6: memref<128x128xf32, #tpu.memory_space<vmem>>, %arg7: memref<1x128xf32, #tpu.memory_space<vmem>>, %arg8: memref<128x384xf32, #tpu.memory_space<vmem>>, %arg9: memref<1x384xf32, #tpu.memory_space<vmem>>, %arg10: memref<1x1x384xf32, #tpu.memory_space<vmem>>) attributes {dimension_semantics = [#tpu.dimension_semantics<parallel>], iteration_bounds = array<i64: 2>, scalar_prefetch = 0 : i64, scratch_operands = 0 : i64, tpu.core_type = #tpu.core_type<tc>, window_params = [{transform_indices = @transform_0, window_bounds = array<i64: 1, 256, 128>}, {pipeline_mode = #tpu.pipeline_mode<synchronous>, transform_indices = @transform_1, window_bounds = array<i64: 128, 128>}, {pipeline_mode = #tpu.pipeline_mode<synchronous>, transform_indices = @transform_2, window_bounds = array<i64: 1, 128>}, {pipeline_mode = #tpu.pipeline_mode<synchronous>, transform_indices = @transform_3, window_bounds = array<i64: 128, 128>}, {pipeline_mode = #tpu.pipeline_mode<synchronous>, transform_indices = @transform_4, window_bounds = array<i64: 1, 128>}, {pipeline_mode = #tpu.pipeline_mode<synchronous>, transform_indices = @transform_5, window_bounds = array<i64: 128, 128>}, {pipeline_mode = #tpu.pipeline_mode<synchronous>, transform_indices = @transform_6, window_bounds = array<i64: 1, 128>}, {pipeline_mode = #tpu.pipeline_mode<synchronous>, transform_indices = @transform_7, window_bounds = array<i64: 128, 384>}, {pipeline_mode = #tpu.pipeline_mode<synchronous>, transform_indices = @transform_8, window_bounds = array<i64: 1, 384>}, {transform_indices = @transform_9, window_bounds = array<i64: 1, 1, 384>}]} {
    %c0 = arith.constant 0 : index
    %c0_0 = arith.constant 0 : index
    %c0_1 = arith.constant 0 : index
    %0 = vector.load %arg1[%c0, %c0_0, %c0_1] : memref<1x256x128xf32, #tpu.memory_space<vmem>>, vector<1x256x128xf32>
    %1 = vector.shape_cast %0 : vector<1x256x128xf32> to vector<256x128xf32>
    %c0_2 = arith.constant 0 : index
    %c0_3 = arith.constant 0 : index
    %2 = vector.load %arg2[%c0_2, %c0_3] : memref<128x128xf32, #tpu.memory_space<vmem>>, vector<128x128xf32>
    %cst = arith.constant dense<0.000000e+00> : vector<256x128xf32>
    %3 = tpu.matmul %1, %2, %cst {dimension_numbers = #tpu.dot_dimension_numbers<[1], [0], [0], [1], [0, 0, 1, 1], [], []>} : vector<256x128xf32>, vector<128x128xf32>, vector<256x128xf32> -> vector<256x128xf32>
    %c0_4 = arith.constant 0 : index
    %c0_5 = arith.constant 0 : index
    %4 = vector.load %arg3[%c0_4, %c0_5] : memref<1x128xf32, #tpu.memory_space<vmem>>, vector<1x128xf32>
    %5 = vector.broadcast %4 : vector<1x128xf32> to vector<256x128xf32>
    %6 = arith.addf %3, %5 : vector<256x128xf32>
    %cst_6 = arith.constant 0.000000e+00 : f32
    %7 = vector.broadcast %cst_6 : f32 to vector<256x128xf32>
    %8 = arith.maximumf %6, %7 : vector<256x128xf32>
    %cst_7 = arith.constant dense<0.000000e+00> : vector<128xf32>
    %9 = vector.multi_reduction <add>, %8, %cst_7 [0] : vector<256x128xf32> to vector<128xf32>
    %10 = vector.shape_cast %9 : vector<128xf32> to vector<1x128xf32>
    %cst_8 = arith.constant 2.560000e+02 : f32
    %11 = vector.broadcast %cst_8 : f32 to vector<1x128xf32>
    %12 = arith.divf %10, %11 : vector<1x128xf32>
    %c0_9 = arith.constant 0 : index
    %c0_10 = arith.constant 0 : index
    %13 = vector.load %arg4[%c0_9, %c0_10] : memref<128x128xf32, #tpu.memory_space<vmem>>, vector<128x128xf32>
    %cst_11 = arith.constant dense<0.000000e+00> : vector<1x128xf32>
    %14 = tpu.matmul %12, %13, %cst_11 {dimension_numbers = #tpu.dot_dimension_numbers<[1], [0], [0], [1], [0, 0, 1, 1], [], []>} : vector<1x128xf32>, vector<128x128xf32>, vector<1x128xf32> -> vector<1x128xf32>
    %c0_12 = arith.constant 0 : index
    %c0_13 = arith.constant 0 : index
    %15 = vector.load %arg5[%c0_12, %c0_13] : memref<1x128xf32, #tpu.memory_space<vmem>>, vector<1x128xf32>
    %16 = arith.addf %14, %15 : vector<1x128xf32>
    %cst_14 = arith.constant 0.000000e+00 : f32
    %17 = vector.broadcast %cst_14 : f32 to vector<1x128xf32>
    %18 = arith.maximumf %16, %17 : vector<1x128xf32>
    %c0_15 = arith.constant 0 : index
    %c0_16 = arith.constant 0 : index
    %19 = vector.load %arg6[%c0_15, %c0_16] : memref<128x128xf32, #tpu.memory_space<vmem>>, vector<128x128xf32>
    %cst_17 = arith.constant dense<0.000000e+00> : vector<1x128xf32>
    %20 = tpu.matmul %18, %19, %cst_17 {dimension_numbers = #tpu.dot_dimension_numbers<[1], [0], [0], [1], [0, 0, 1, 1], [], []>} : vector<1x128xf32>, vector<128x128xf32>, vector<1x128xf32> -> vector<1x128xf32>
    %c0_18 = arith.constant 0 : index
    %c0_19 = arith.constant 0 : index
    %21 = vector.load %arg7[%c0_18, %c0_19] : memref<1x128xf32, #tpu.memory_space<vmem>>, vector<1x128xf32>
    %22 = arith.addf %20, %21 : vector<1x128xf32>
    %23 = arith.negf %22 : vector<1x128xf32>
    %24 = math.exp %23 : vector<1x128xf32>
    %cst_20 = arith.constant 1.000000e+00 : f32
    %25 = vector.broadcast %cst_20 : f32 to vector<1x128xf32>
    %26 = arith.addf %25, %24 : vector<1x128xf32>
    %27 = arith.divf %25, %26 : vector<1x128xf32>
    %28 = arith.mulf %12, %27 : vector<1x128xf32>
    %c0_21 = arith.constant 0 : index
    %c0_22 = arith.constant 0 : index
    %29 = vector.load %arg8[%c0_21, %c0_22] : memref<128x384xf32, #tpu.memory_space<vmem>>, vector<128x384xf32>
    %cst_23 = arith.constant dense<0.000000e+00> : vector<1x384xf32>
    %30 = tpu.matmul %28, %29, %cst_23 {dimension_numbers = #tpu.dot_dimension_numbers<[1], [0], [0], [1], [0, 0, 1, 1], [], []>} : vector<1x128xf32>, vector<128x384xf32>, vector<1x384xf32> -> vector<1x384xf32>
    %c0_24 = arith.constant 0 : index
    %c0_25 = arith.constant 0 : index
    %31 = vector.load %arg9[%c0_24, %c0_25] : memref<1x384xf32, #tpu.memory_space<vmem>>, vector<1x384xf32>
    %32 = arith.addf %30, %31 : vector<1x384xf32>
    %c0_26 = arith.constant 0 : index
    %c0_27 = arith.constant 0 : index
    %c0_28 = arith.constant 0 : index
    %33 = vector.load %arg10[%c0_26, %c0_27, %c0_28] : memref<1x1x384xf32, #tpu.memory_space<vmem>>, vector<1x1x384xf32>
    %34 = vector.shape_cast %33 : vector<1x1x384xf32> to vector<1x384xf32>
    %35 = vector.shape_cast %32 : vector<1x384xf32> to vector<1x1x384xf32>
    tpu.vector_store %arg10[%c0_26, %c0_27, %c0_28], %35 {strides = array<i32>} : memref<1x1x384xf32, #tpu.memory_space<vmem>>, vector<1x1x384xf32>,
    return
  }
  func.func @transform_0(%arg0: i32) -> (i32, i32, i32) {
    %c0_i32 = arith.constant 0 : i32
    %c0_i32_0 = arith.constant 0 : i32
    %c0_i32_1 = arith.constant 0 : i32
    return %arg0, %c0_i32, %c0_i32_0 : i32, i32, i32
  }
  func.func @transform_1(%arg0: i32) -> (i32, i32) {
    %c0_i32 = arith.constant 0 : i32
    %c0_i32_0 = arith.constant 0 : i32
    %c0_i32_1 = arith.constant 0 : i32
    return %c0_i32, %c0_i32_0 : i32, i32
  }
  func.func @transform_2(%arg0: i32) -> (i32, i32) {
    %c0_i32 = arith.constant 0 : i32
    %c0_i32_0 = arith.constant 0 : i32
    %c0_i32_1 = arith.constant 0 : i32
    return %c0_i32, %c0_i32_0 : i32, i32
  }
  func.func @transform_3(%arg0: i32) -> (i32, i32) {
    %c0_i32 = arith.constant 0 : i32
    %c0_i32_0 = arith.constant 0 : i32
    %c0_i32_1 = arith.constant 0 : i32
    return %c0_i32, %c0_i32_0 : i32, i32
  }
  func.func @transform_4(%arg0: i32) -> (i32, i32) {
    %c0_i32 = arith.constant 0 : i32
    %c0_i32_0 = arith.constant 0 : i32
    %c0_i32_1 = arith.constant 0 : i32
    return %c0_i32, %c0_i32_0 : i32, i32
  }
  func.func @transform_5(%arg0: i32) -> (i32, i32) {
    %c0_i32 = arith.constant 0 : i32
    %c0_i32_0 = arith.constant 0 : i32
    %c0_i32_1 = arith.constant 0 : i32
    return %c0_i32, %c0_i32_0 : i32, i32
  }
  func.func @transform_6(%arg0: i32) -> (i32, i32) {
    %c0_i32 = arith.constant 0 : i32
    %c0_i32_0 = arith.constant 0 : i32
    %c0_i32_1 = arith.constant 0 : i32
    return %c0_i32, %c0_i32_0 : i32, i32
  }
  func.func @transform_7(%arg0: i32) -> (i32, i32) {
    %c0_i32 = arith.constant 0 : i32
    %c0_i32_0 = arith.constant 0 : i32
    %c0_i32_1 = arith.constant 0 : i32
    return %c0_i32, %c0_i32_0 : i32, i32
  }
  func.func @transform_8(%arg0: i32) -> (i32, i32) {
    %c0_i32 = arith.constant 0 : i32
    %c0_i32_0 = arith.constant 0 : i32
    %c0_i32_1 = arith.constant 0 : i32
    return %c0_i32, %c0_i32_0 : i32, i32
  }
  func.func @transform_9(%arg0: i32) -> (i32, i32, i32) {
    %c0_i32 = arith.constant 0 : i32
    %c0_i32_0 = arith.constant 0 : i32
    %c0_i32_1 = arith.constant 0 : i32
    return %arg0, %c0_i32, %c0_i32_0 : i32, i32, i32
  }
}

</mosaic_0001>

<bundles_post_ra>
// kernel: finetune_image_forward.1
= control target key start
LH: loop header
LB: loop body
LE: loop exit
PB: predicated region body
PF: predicated region fallthrough
CT: control target
= control target key end

     0   :  { %s1528_s30 = smov 0   ;;  %s1976_s0 = inlined_call_operand.vmem [shape: f32[2,256,128], index: 0, kind: input, shape index: {}]   ;;  %s1977_s1 = inlined_call_operand.vmem [shape: f32[128,128], index: 1, kind: input, shape index: {}]   ;;  %s1978_s2 = inlined_call_operand.vmem [shape: f32[1,128], index: 2, kind: input, shape index: {}]   ;;  %s1979_s3 = inlined_call_operand.vmem [shape: f32[128,128], index: 3, kind: input, shape index: {}]   ;;  %s1980_s4 = inlined_call_operand.vmem [shape: f32[1,128], index: 4, kind: input, shape index: {}]   ;;  %s1981_s5 = inlined_call_operand.vmem [shape: f32[128,128], index: 5, kind: input, shape index: {}]   ;;  %s1982_s6 = inlined_call_operand.vmem [shape: f32[1,128], index: 6, kind: input, shape index: {}]   ;;  %s1983_s7 = inlined_call_operand.vmem [shape: f32[128,384], index: 7, kind: input, shape index: {}]   ;;  %s1984_s8 = inlined_call_operand.vmem [shape: f32[1,384], index: 8, kind: input, shape index: {}]   ;;  %s1985_s9 = inlined_call_operand.vmem [shape: f32[2,1,384], index: 9, kind: output, shape index: {}]  }
   0x1 LB: > { %s1155_s10 = sadd.s32 4294967295, %s1473_s30   ;;  %p1159_p0 = scmp.ge.s32.totalorder %s1473_s30, 1  ;;  %s1473_s30 = sphi %s1528_s30, %s19_s30  }
   0x2   : > { %p287_p1 = scmp.lt.s32.totalorder %s1473_s30, 3 }
   0x4   : > { %p288_p2 = pnand %p1159_p0, %p287_p1 }
   0x5   : > { %p322_p3 = scmp.lt.s32.totalorder (!%p288_p2), %s1155_s10, 1 }
   0x6   : > { %291 = sbr.rel (%p288_p2) target bundleno = 953 (0x3b9), region = 56 }
   0xb   : > { %v378_v0 = vld [vmem:[%s1977_s1 + $0x78] sm:$0xff]  ;;  %v377_v1 = vld [vmem:[%s1977_s1 + $0x70] sm:$0xff]  ;;  %v376_v2 = vld [vmem:[%s1977_s1 + $0x68] sm:$0xff]  ;;  %s1987_s10 = smov (!%p322_p3, %s1155_s10), 1  ;;  %v1475_v48 = vmov 0.0   ;;  %vm1476_vm0 = vmmov 0  }
   0xc   : > { %1266 = vmatprep.subr.mxu0 %v378_v0  ;;  %v375_v3 = vld [vmem:[%s1977_s1 + $0x60] sm:$0xff]  ;;  %s1166_s19 = sshll.u32 %s1987_s10, 8  ;;  %v374_v4 = vld [vmem:[%s1977_s1 + $0x58] sm:$0xff]  ;;  %v373_v6 = vld [vmem:[%s1977_s1 + $0x50] sm:$0xff]  ;;  %1346 = vmatprep.subr.mxu1 %v1475_v48  ;;  %s1451_s26 = smul.u32 3, %s1987_s10 }
   0xd   : > { %1267 = vmatpush3.msra.mxu0 %v378_v0  ;;  %s1554_s22 = scalar_lea.vmem %s1976_s0, %s1166_s19  ;;  %v372_v7 = vld [vmem:[%s1977_s1 + $0x48] sm:$0xff]  ;;  %v371_v8 = vld [vmem:[%s1977_s1 + $0x40] sm:$0xff]  ;;  %v370_v9 = vld [vmem:[%s1977_s1 + $0x38] sm:$0xff]  ;;  %1378 = vmatprep.mubr.msk.f32.mxu1 %vm1476_vm0, %v1475_v48 }
   0xe   : > { %1268 = vmatprep.subr.mxu0 %v377_v1  ;;  %v331_v5 = vld [vmem:[%s1554_s22] sm:$0xff]  ;;  %v369_v10 = vld [vmem:[%s1977_s1 + $0x30] sm:$0xff]  ;;  %v368_v11 = vld [vmem:[%s1977_s1 + $0x28] sm:$0xff]  ;;  %s330_s29 = scalar_lea.vmem %s1985_s9, %s1451_s26 }
   0xf   : > { %1269 = vmatpush3.msra.mxu0 %v377_v1  ;;  %1298 = vmatprep.mubr.f32.mxu0 %v331_v5  ;;  %v367_v12 = vld [vmem:[%s1977_s1 + $0x20] sm:$0xff]  ;;  %v366_v13 = vld [vmem:[%s1977_s1 + $0x18] sm:$0xff]  ;;  %v365_v14 = vld [vmem:[%s1977_s1 + $0x10] sm:$0xff] }
  0x10   : > { %1270 = vmatprep.subr.mxu0 %v376_v2  ;;  %v364_v15 = vld [vmem:[%s1977_s1 + $0x8] sm:$0xff]  ;;  %v363_v16 = vld [vmem:[%s1977_s1] sm:$0xff]  ;;  %v333_v18 = vld [vmem:[%s1554_s22 + $0x10] sm:$0xff] }
  0x11   : > { %1271 = vmatpush3.msra.mxu0 %v376_v2  ;;  %v332_v17 = vld [vmem:[%s1554_s22 + $0x8] sm:$0xff]  ;;  %v334_v19 = vld [vmem:[%s1554_s22 + $0x18] sm:$0xff]  ;;  %v335_v20 = vld [vmem:[%s1554_s22 + $0x20] sm:$0xff] }
  0x12   : > { %1272 = vmatprep.subr.mxu0 %v375_v3  ;;  %v336_v21 = vld [vmem:[%s1554_s22 + $0x28] sm:$0xff]  ;;  %v337_v22 = vld [vmem:[%s1554_s22 + $0x30] sm:$0xff]  ;;  %v338_v23 = vld [vmem:[%s1554_s22 + $0x38] sm:$0xff] }
  0x13   : > { %1273 = vmatpush3.msra.mxu0 %v375_v3  ;;  %v339_v24 = vld [vmem:[%s1554_s22 + $0x40] sm:$0xff]  ;;  %v340_v25 = vld [vmem:[%s1554_s22 + $0x48] sm:$0xff]  ;;  %v341_v26 = vld [vmem:[%s1554_s22 + $0x50] sm:$0xff] }
  0x14   : > { %1274 = vmatprep.subr.mxu0 %v374_v4  ;;  %v342_v27 = vld [vmem:[%s1554_s22 + $0x58] sm:$0xff]  ;;  %v343_v28 = vld [vmem:[%s1554_s22 + $0x60] sm:$0xff]  ;;  %v344_v29 = vld [vmem:[%s1554_s22 + $0x68] sm:$0xff] }
  0x15   : > { %1275 = vmatpush3.msra.mxu0 %v374_v4  ;;  %v345_v30 = vld [vmem:[%s1554_s22 + $0x70] sm:$0xff]  ;;  %v346_v31 = vld [vmem:[%s1554_s22 + $0x78] sm:$0xff]  ;;  %v347_v32 = vld [vmem:[%s1554_s22 + $0x80] sm:$0xff] }
  0x16   : > { %1276 = vmatprep.subr.mxu0 %v373_v6  ;;  %v348_v33 = vld [vmem:[%s1554_s22 + $0x88] sm:$0xff]  ;;  %v349_v34 = vld [vmem:[%s1554_s22 + $0x90] sm:$0xff]  ;;  %v350_v35 = vld [vmem:[%s1554_s22 + $0x98] sm:$0xff] }
  0x17   : > { %1277 = vmatpush3.msra.mxu0 %v373_v6  ;;  %v351_v36 = vld [vmem:[%s1554_s22 + $0xa0] sm:$0xff]  ;;  %v352_v37 = vld [vmem:[%s1554_s22 + $0xa8] sm:$0xff]  ;;  %v353_v38 = vld [vmem:[%s1554_s22 + $0xb0] sm:$0xff] }
  0x18   : > { %1278 = vmatprep.subr.mxu0 %v372_v7  ;;  %v354_v39 = vld [vmem:[%s1554_s22 + $0xb8] sm:$0xff]  ;;  %v355_v40 = vld [vmem:[%s1554_s22 + $0xc0] sm:$0xff]  ;;  %v356_v41 = vld [vmem:[%s1554_s22 + $0xc8] sm:$0xff] }
  0x19   : > { %1279 = vmatpush3.msra.mxu0 %v372_v7  ;;  %v357_v42 = vld [vmem:[%s1554_s22 + $0xd0] sm:$0xff]  ;;  %v358_v43 = vld [vmem:[%s1554_s22 + $0xd8] sm:$0xff]  ;;  %v359_v44 = vld [vmem:[%s1554_s22 + $0xe0] sm:$0xff] }
  0x1a   : > { %1280 = vmatprep.subr.mxu0 %v371_v8  ;;  %v360_v45 = vld [vmem:[%s1554_s22 + $0xe8] sm:$0xff]  ;;  %v361_v46 = vld [vmem:[%s1554_s22 + $0xf0] sm:$0xff]  ;;  %v362_v47 = vld [vmem:[%s1554_s22 + $0xf8] sm:$0xff] }
  0x1b   : > { %1281 = vmatpush3.msra.mxu0 %v371_v8  ;;  %v697_v49 = vld [vmem:[%s1979_s3 + $0x78] sm:$0xff]  ;;  %v696_v50 = vld [vmem:[%s1979_s3 + $0x70] sm:$0xff]  ;;  %v695_v51 = vld [vmem:[%s1979_s3 + $0x68] sm:$0xff] }
  0x1c   : > { %1282 = vmatprep.subr.mxu0 %v370_v9  ;;  %1347 = vmatpush3.msra.mxu1 %v697_v49  ;;  %v694_v52 = vld [vmem:[%s1979_s3 + $0x60] sm:$0xff]  ;;  %v693_v53 = vld [vmem:[%s1979_s3 + $0x58] sm:$0xff]  ;;  %v692_v54 = vld [vmem:[%s1979_s3 + $0x50] sm:$0xff] }
  0x1d   : > { %1283 = vmatpush3.msra.mxu0 %v370_v9  ;;  %1348 = vmatprep.subr.mxu1 %v1475_v48  ;;  %v691_v55 = vld [vmem:[%s1979_s3 + $0x48] sm:$0xff]  ;;  %v690_v56 = vld [vmem:[%s1979_s3 + $0x40] sm:$0xff]  ;;  %v689_v57 = vld [vmem:[%s1979_s3 + $0x38] sm:$0xff] }
  0x1e   : > { %1284 = vmatprep.subr.mxu0 %v369_v10  ;;  %1349 = vmatpush3.msra.mxu1 %v696_v50  ;;  %v688_v58 = vld [vmem:[%s1979_s3 + $0x30] sm:$0xff]  ;;  %v687_v59 = vld [vmem:[%s1979_s3 + $0x28] sm:$0xff]  ;;  %v686_v60 = vld [vmem:[%s1979_s3 + $0x20] sm:$0xff] }
  0x1f   : > { %1285 = vmatpush3.msra.mxu0 %v369_v10  ;;  %1350 = vmatprep.subr.mxu1 %v1475_v48  ;;  %v685_v61 = vld [vmem:[%s1979_s3 + $0x18] sm:$0xff]  ;;  %v684_v62 = vld [vmem:[%s1979_s3 + $0x10] sm:$0xff]  ;;  %v683_v63 = vld [vmem:[%s1979_s3 + $0x8] sm:$0xff] }
  0x20   : > { %1286 = vmatprep.subr.mxu0 %v368_v11  ;;  %1351 = vmatpush3.msra.mxu1 %v695_v51  ;;  %v682_v0 = vld [vmem:[%s1979_s3] sm:$0xff] }
  0x21   : > { %1287 = vmatpush3.msra.mxu0 %v368_v11  ;;  %1352 = vmatprep.subr.mxu1 %v1475_v48  ;;  %v1695_v2 = vld [vmem:[%s1978_s2] ss:$0 sm:$0xff] }
  0x22   : > { %1288 = vmatprep.subr.mxu0 %v367_v12  ;;  %1353 = vmatpush3.msra.mxu1 %v694_v52 }
  0x23   : > { %1289 = vmatpush3.msra.mxu0 %v367_v12  ;;  %1354 = vmatprep.subr.mxu1 %v1475_v48 }
  0x24   : > { %1290 = vmatprep.subr.mxu0 %v366_v13  ;;  %1355 = vmatpush3.msra.mxu1 %v693_v53 }
  0x25   : > { %1291 = vmatpush3.msra.mxu0 %v366_v13  ;;  %1356 = vmatprep.subr.mxu1 %v1475_v48 }
  0x26   : > { %1292 = vmatprep.subr.mxu0 %v365_v14  ;;  %1357 = vmatpush3.msra.mxu1 %v692_v54 }
  0x27   : > { %1293 = vmatpush3.msra.mxu0 %v365_v14  ;;  %1358 = vmatprep.subr.mxu1 %v1475_v48 }
  0x28   : > { %1294 = vmatprep.subr.mxu0 %v364_v15  ;;  %1359 = vmatpush3.msra.mxu1 %v691_v55 }
  0x29   : > { %1295 = vmatpush3.msra.mxu0 %v364_v15  ;;  %1360 = vmatprep.subr.mxu1 %v1475_v48 }
  0x2a   : > { %1296 = vmatprep.subr.mxu0 %v363_v16  ;;  %1361 = vmatpush3.msra.mxu1 %v690_v56 }
  0x2b   : > { %1297 = vmatpush3.msra.mxu0 %v363_v16  ;;  %1362 = vmatprep.subr.mxu1 %v1475_v48 }
  0x2c   : > { %1299 = vmatmul.mubr.f32.vlgmr.msra.gmra.mxu0 %v332_v17  ;;  %1363 = vmatpush3.msra.mxu1 %v689_v57 }
  0x2d   : > { %1301 = vmatprep.mubr.f32.mxu0 %v333_v18  ;;  %1364 = vmatprep.subr.mxu1 %v1475_v48 }
  0x2e   : > { %1365 = vmatpush3.msra.mxu1 %v688_v58 }
  0x2f   : > { %1366 = vmatprep.subr.mxu1 %v1475_v48 }
  0x30   : > { %1302 = vmatmul.mubr.f32.gmra.mxu0 %v334_v19  ;;  %1367 = vmatpush3.msra.mxu1 %v687_v59 }
  0x31   : > { %1304 = vmatprep.mubr.f32.mxu0 %v335_v20  ;;  %1368 = vmatprep.subr.mxu1 %v1475_v48 }
  0x32   : > { %1369 = vmatpush3.msra.mxu1 %v686_v60 }
  0x33   : > { %1370 = vmatprep.subr.mxu1 %v1475_v48 }
  0x34   : > { %1305 = vmatmul.mubr.f32.gmra.mxu0 %v336_v21  ;;  %1371 = vmatpush3.msra.mxu1 %v685_v61 }
  0x35   : > { %1307 = vmatprep.mubr.f32.mxu0 %v337_v22  ;;  %1372 = vmatprep.subr.mxu1 %v1475_v48 }
  0x36   : > { %1373 = vmatpush3.msra.mxu1 %v684_v62 }
  0x37   : > { %1374 = vmatprep.subr.mxu1 %v1475_v48 }
  0x38   : > { %1308 = vmatmul.mubr.f32.gmra.mxu0 %v338_v23  ;;  %1375 = vmatpush3.msra.mxu1 %v683_v63 }
  0x39   : > { %1310 = vmatprep.mubr.f32.mxu0 %v339_v24  ;;  %1376 = vmatprep.subr.mxu1 %v1475_v48 }
  0x3a   : > { %1377 = vmatpush3.msra.mxu1 %v682_v0 }
  0x3b   : > { %1381 = vmatprep.subr.mxu1 %v1475_v48 }
  0x3c   : > { %1311 = vmatmul.mubr.f32.gmra.mxu0 %v340_v25 }
  0x3d   : > { %1313 = vmatprep.mubr.f32.mxu0 %v341_v26 }
  0x40   : > { %1314 = vmatmul.mubr.f32.gmra.mxu0 %v342_v27 }
  0x41   : > { %1316 = vmatprep.mubr.f32.mxu0 %v343_v28 }
  0x44   : > { %1317 = vmatmul.mubr.f32.gmra.mxu0 %v344_v29 }
  0x45   : > { %1319 = vmatprep.mubr.f32.mxu0 %v345_v30 }
  0x48   : > { %1320 = vmatmul.mubr.f32.gmra.mxu0 %v346_v31 }
  0x49   : > { %1322 = vmatprep.mubr.f32.mxu0 %v347_v32 }
  0x4c   : > { %1323 = vmatmul.mubr.f32.gmra.mxu0 %v348_v33 }
  0x4d   : > { %1325 = vmatprep.mubr.f32.mxu0 %v349_v34 }
  0x50   : > { %1326 = vmatmul.mubr.f32.gmra.mxu0 %v350_v35 }
  0x51   : > { %1328 = vmatprep.mubr.f32.mxu0 %v351_v36 }
  0x54   : > { %1329 = vmatmul.mubr.f32.gmra.mxu0 %v352_v37 }
  0x55   : > { %1331 = vmatprep.mubr.f32.mxu0 %v353_v38 }
  0x58   : > { %1332 = vmatmul.mubr.f32.gmra.mxu0 %v354_v39 }
  0x59   : > { %1334 = vmatprep.mubr.f32.mxu0 %v355_v40 }
  0x5c   : > { %1335 = vmatmul.mubr.f32.gmra.mxu0 %v356_v41 }
  0x5d   : > { %1337 = vmatprep.mubr.f32.mxu0 %v357_v42 }
  0x60   : > { %1338 = vmatmul.mubr.f32.gmra.mxu0 %v358_v43 }
  0x61   : > { %1340 = vmatprep.mubr.f32.mxu0 %v359_v44 }
  0x64   : > { %1341 = vmatmul.mubr.f32.gmra.mxu0 %v360_v45 }
  0x65   : > { %1343 = vmatprep.mubr.f32.mxu0 %v361_v46 }
  0x68   : > { %1344 = vmatmul.mubr.f32.gmra.mxu0 %v362_v47 }
  0x69   : > { %993 = vmatprep.mubr.f32.mxu0 %v1475_v48 }
  0xec   : > { %v1300_v1 = vpop.f32.mrf.mxu0 }
  0xed   : > { %v458_v4 = vadd.f32 %v1300_v1, %v1695_v2 }
  0xee   : > { %v452_v3 = vpop.f32.mrf.mxu0 }
  0xef   : > { %v453_v5 = vadd.f32 %v1695_v2, %v452_v3  ;;  %v612_v9 = vmax.f32 %v458_v4, 0.0 }
  0xf0   : > { %v1303_v6 = vpop.f32.mrf.mxu0 }
  0xf1   : > { %v611_v7 = vmax.f32 %v453_v5, 0.0  ;;  %v468_v10 = vadd.f32 %v1303_v6, %v1695_v2 }
  0xf2   : > { %v462_v8 = vpop.f32.mrf.mxu0 }
  0xf3   : > { %v463_v11 = vadd.f32 %v1695_v2, %v462_v8  ;;  %v643_v13 = vadd.f32 %v612_v9, %v611_v7  ;;  %v614_v16 = vmax.f32 %v468_v10, 0.0 }
  0xf4   : > { %v1306_v12 = vpop.f32.mrf.mxu0 }
  0xf5   : > { %v613_v14 = vmax.f32 %v463_v11, 0.0  ;;  %v478_v18 = vadd.f32 %v1306_v12, %v1695_v2 }
  0xf6   : > { %v472_v15 = vpop.f32.mrf.mxu0 }
  0xf7   : > { %v644_v17 = vadd.f32 %v643_v13, %v613_v14  ;;  %v473_v19 = vadd.f32 %v1695_v2, %v472_v15  ;;  %v616_v24 = vmax.f32 %v478_v18, 0.0 }
  0xf8   : > { %v1309_v20 = vpop.f32.mrf.mxu0 }
  0xf9   : > { %v615_v21 = vmax.f32 %v473_v19, 0.0  ;;  %v645_v22 = vadd.f32 %v644_v17, %v614_v16  ;;  %v488_v26 = vadd.f32 %v1309_v20, %v1695_v2 }
  0xfa   : > { %v482_v23 = vpop.f32.mrf.mxu0 }
  0xfb   : > { %v646_v25 = vadd.f32 %v645_v22, %v615_v21  ;;  %v483_v27 = vadd.f32 %v1695_v2, %v482_v23  ;;  %v618_v32 = vmax.f32 %v488_v26, 0.0 }
  0xfc   : > { %v1312_v28 = vpop.f32.mrf.mxu0 }
  0xfd   : > { %v617_v29 = vmax.f32 %v483_v27, 0.0  ;;  %v647_v30 = vadd.f32 %v646_v25, %v616_v24  ;;  %v498_v34 = vadd.f32 %v1312_v28, %v1695_v2 }
  0xfe   : > { %v492_v31 = vpop.f32.mrf.mxu0 }
  0xff   : > { %v648_v33 = vadd.f32 %v647_v30, %v617_v29  ;;  %v493_v35 = vadd.f32 %v1695_v2, %v492_v31  ;;  %v620_v40 = vmax.f32 %v498_v34, 0.0 }
 0x100   : > { %v1315_v36 = vpop.f32.mrf.mxu0 }
 0x101   : > { %v619_v37 = vmax.f32 %v493_v35, 0.0  ;;  %v649_v38 = vadd.f32 %v648_v33, %v618_v32  ;;  %v508_v42 = vadd.f32 %v1315_v36, %v1695_v2 }
 0x102   : > { %v502_v39 = vpop.f32.mrf.mxu0 }
 0x103   : > { %v650_v41 = vadd.f32 %v649_v38, %v619_v37  ;;  %v503_v43 = vadd.f32 %v1695_v2, %v502_v39  ;;  %v622_v49 = vmax.f32 %v508_v42, 0.0 }
 0x104   : > { %v1318_v44 = vpop.f32.mrf.mxu0 }
 0x105   : > { %v621_v45 = vmax.f32 %v503_v43, 0.0  ;;  %v651_v46 = vadd.f32 %v650_v41, %v620_v40  ;;  %v518_v51 = vadd.f32 %v1318_v44, %v1695_v2 }
 0x106   : > { %v512_v47 = vpop.f32.mrf.mxu0 }
 0x107   : > { %v652_v50 = vadd.f32 %v651_v46, %v621_v45  ;;  %v513_v52 = vadd.f32 %v1695_v2, %v512_v47  ;;  %v624_v57 = vmax.f32 %v518_v51, 0.0 }
 0x108   : > { %v1321_v53 = vpop.f32.mrf.mxu0 }
 0x109   : > { %v623_v54 = vmax.f32 %v513_v52, 0.0  ;;  %v653_v55 = vadd.f32 %v652_v50, %v622_v49  ;;  %v528_v59 = vadd.f32 %v1321_v53, %v1695_v2 }
 0x10a   : > { %v522_v56 = vpop.f32.mrf.mxu0 }
 0x10b   : > { %v654_v58 = vadd.f32 %v653_v55, %v623_v54  ;;  %v523_v60 = vadd.f32 %v1695_v2, %v522_v56  ;;  %v626_v1 = vmax.f32 %v528_v59, 0.0 }
 0x10c   : > { %v1324_v61 = vpop.f32.mrf.mxu0 }
 0x10d   : > { %v625_v62 = vmax.f32 %v523_v60, 0.0  ;;  %v655_v63 = vadd.f32 %v654_v58, %v624_v57  ;;  %v538_v4 = vadd.f32 %v1324_v61, %v1695_v2 }
 0x10e   : > { %v532_v0 = vpop.f32.mrf.mxu0 }
 0x10f   : > { %v656_v3 = vadd.f32 %v655_v63, %v625_v62  ;;  %v533_v5 = vadd.f32 %v1695_v2, %v532_v0  ;;  %v628_v10 = vmax.f32 %v538_v4, 0.0 }
 0x110   : > { %v1327_v6 = vpop.f32.mrf.mxu0 }
 0x111   : > { %v627_v7 = vmax.f32 %v533_v5, 0.0  ;;  %v657_v8 = vadd.f32 %v656_v3, %v626_v1  ;;  %v548_v12 = vadd.f32 %v1327_v6, %v1695_v2 }
 0x112   : > { %v542_v9 = vpop.f32.mrf.mxu0 }
 0x113   : > { %v658_v11 = vadd.f32 %v657_v8, %v627_v7  ;;  %v543_v13 = vadd.f32 %v1695_v2, %v542_v9  ;;  %v630_v18 = vmax.f32 %v548_v12, 0.0  ;;  %v785_v12 = vld [vmem:[%s1981_s5 + $0x78] sm:$0xff] }
 0x114   : > { %v1330_v14 = vpop.f32.mrf.mxu0 }
 0x115   : > { %v629_v15 = vmax.f32 %v543_v13, 0.0  ;;  %v659_v16 = vadd.f32 %v658_v11, %v628_v10  ;;  %v558_v20 = vadd.f32 %v1330_v14, %v1695_v2  ;;  %v783_v13 = vld [vmem:[%s1981_s5 + $0x68] sm:$0xff]  ;;  %v782_v14 = vld [vmem:[%s1981_s5 + $0x60] sm:$0xff] }
 0x116   : > { %v552_v17 = vpop.f32.mrf.mxu0 }
 0x117   : > { %v660_v19 = vadd.f32 %v659_v16, %v629_v15  ;;  %v553_v21 = vadd.f32 %v1695_v2, %v552_v17  ;;  %v632_v26 = vmax.f32 %v558_v20, 0.0  ;;  %v781_v15 = vld [vmem:[%s1981_s5 + $0x58] sm:$0xff]  ;;  %v780_v16 = vld [vmem:[%s1981_s5 + $0x50] sm:$0xff]  ;;  %v779_v17 = vld [vmem:[%s1981_s5 + $0x48] sm:$0xff] }
 0x118   : > { %v1333_v22 = vpop.f32.mrf.mxu0  ;;  %v776_v20 = vld [vmem:[%s1981_s5 + $0x30] sm:$0xff] }
 0x119   : > { %v631_v23 = vmax.f32 %v553_v21, 0.0  ;;  %v661_v24 = vadd.f32 %v660_v19, %v630_v18  ;;  %v568_v28 = vadd.f32 %v1333_v22, %v1695_v2  ;;  %v778_v18 = vld [vmem:[%s1981_s5 + $0x40] sm:$0xff]  ;;  %v777_v19 = vld [vmem:[%s1981_s5 + $0x38] sm:$0xff]  ;;  %v775_v21 = vld [vmem:[%s1981_s5 + $0x28] sm:$0xff] }
 0x11a   : > { %v562_v25 = vpop.f32.mrf.mxu0  ;;  %v774_v22 = vld [vmem:[%s1981_s5 + $0x20] sm:$0xff] }
 0x11b   : > { %v662_v27 = vadd.f32 %v661_v24, %v631_v23  ;;  %v563_v29 = vadd.f32 %v1695_v2, %v562_v25  ;;  %v634_v34 = vmax.f32 %v568_v28, 0.0  ;;  %v773_v23 = vld [vmem:[%s1981_s5 + $0x18] sm:$0xff]  ;;  %v772_v24 = vld [vmem:[%s1981_s5 + $0x10] sm:$0xff]  ;;  %v771_v25 = vld [vmem:[%s1981_s5 + $0x8] sm:$0xff] }
 0x11c   : > { %v1336_v30 = vpop.f32.mrf.mxu0  ;;  %v909_v28 = vld [vmem:[%s1983_s7 + $0x168] sm:$0xff] }
 0x11d   : > { %v633_v31 = vmax.f32 %v563_v29, 0.0  ;;  %v663_v32 = vadd.f32 %v662_v27, %v632_v26  ;;  %v578_v36 = vadd.f32 %v1336_v30, %v1695_v2  ;;  %v770_v26 = vld [vmem:[%s1981_s5] sm:$0xff]  ;;  %v910_v27 = vld [vmem:[%s1983_s7 + $0x170] sm:$0xff]  ;;  %v907_v29 = vld [vmem:[%s1983_s7 + $0x158] sm:$0xff] }
 0x11e   : > { %v572_v33 = vpop.f32.mrf.mxu0  ;;  %929 = vmatprep.subr.mxu0 %v910_v27  ;;  %v906_v30 = vld [vmem:[%s1983_s7 + $0x150] sm:$0xff]  ;;  %v914_v27 = vlaneseq }
 0x11f   : > { %v664_v35 = vadd.f32 %v663_v32, %v633_v31  ;;  %v573_v37 = vadd.f32 %v1695_v2, %v572_v33  ;;  %v636_v42 = vmax.f32 %v578_v36, 0.0  ;;  %930 = vmatpush1.msra.mxu0 %v909_v28  ;;  %v904_v31 = vld [vmem:[%s1983_s7 + $0x140] sm:$0xff]  ;;  %v903_v32 = vld [vmem:[%s1983_s7 + $0x138] sm:$0xff]  ;;  %v901_v33 = vld [vmem:[%s1983_s7 + $0x128] sm:$0xff] }
 0x120   : > { %v1339_v38 = vpop.f32.mrf.mxu0  ;;  %931 = vmatprep.subr.mxu0 %v907_v29  ;;  %v897_v36 = vld [vmem:[%s1983_s7 + $0x108] sm:$0xff]  ;;  %vm1099_vm1 = vcmp.lt.s32.totalorder %v914_v27, 384 }
 0x121   : > { %v635_v39 = vmax.f32 %v573_v37, 0.0  ;;  %v665_v40 = vadd.f32 %v664_v35, %v634_v34  ;;  %v588_v44 = vadd.f32 %v1339_v38, %v1695_v2  ;;  %932 = vmatpush1.msra.mxu0 %v906_v30  ;;  %v900_v34 = vld [vmem:[%s1983_s7 + $0x120] sm:$0xff]  ;;  %v898_v35 = vld [vmem:[%s1983_s7 + $0x110] sm:$0xff]  ;;  %v895_v37 = vld [vmem:[%s1983_s7 + $0xf8] sm:$0xff]  ;;  %v1477_v30 = vmov 1966171168  }
 0x122   : > { %v582_v41 = vpop.f32.mrf.mxu0  ;;  %933 = vmatprep.subr.mxu0 %v904_v31  ;;  %v894_v38 = vld [vmem:[%s1983_s7 + $0xf0] sm:$0xff]  ;;  %v1075_v31 = vunpack.c.l.s4 %v1477_v30 }
 0x123   : > { %v666_v43 = vadd.f32 %v665_v40, %v635_v39  ;;  %v583_v45 = vadd.f32 %v1695_v2, %v582_v41  ;;  %v638_v51 = vmax.f32 %v588_v44, 0.0  ;;  %934 = vmatpush1.msra.mxu0 %v903_v32  ;;  %v892_v39 = vld [vmem:[%s1983_s7 + $0xe0] sm:$0xff]  ;;  %v891_v40 = vld [vmem:[%s1983_s7 + $0xd8] sm:$0xff] }
 0x124   : > { %v1342_v46 = vpop.f32.mrf.mxu0  ;;  %935 = vmatprep.subr.mxu0 %v901_v33  ;;  %v698_v41 = vld [vmem:[%s1980_s4] sm:$0x1] }
 0x125   : > { %v637_v47 = vmax.f32 %v583_v45, 0.0  ;;  %v667_v49 = vadd.f32 %v666_v43, %v636_v42  ;;  %v598_v53 = vadd.f32 %v1342_v46, %v1695_v2  ;;  %936 = vmatpush1.msra.mxu0 %v900_v34  ;;  %v911_v46 = vld [vmem:[%s1983_s7 + $0x178] sm:$0xff]  ;;  %v912_v33 = vld [vmem:[%s1984_s8] sm:$0x7] }
 0x126   : > { %v592_v50 = vpop.f32.mrf.mxu0  ;;  %937 = vmatprep.subr.mxu0 %v898_v35 }
 0x127   : > { %v668_v52 = vadd.f32 %v667_v49, %v637_v47  ;;  %v593_v54 = vadd.f32 %v1695_v2, %v592_v50  ;;  %v640_v59 = vmax.f32 %v598_v53, 0.0  ;;  %938 = vmatpush1.msra.mxu0 %v897_v36  ;;  %v908_v47 = vld [vmem:[%s1983_s7 + $0x160] sm:$0xff]  ;;  %v905_v49 = vld [vmem:[%s1983_s7 + $0x148] sm:$0xff]  ;;  %v902_v50 = vld [vmem:[%s1983_s7 + $0x130] sm:$0xff]  ;;  %v1076_v36 = vunpack.c.0.s8 %v1075_v31 }
 0x128   : > { %v1345_v55 = vpop.f32.mrf.mxu0  ;;  %939 = vmatprep.subr.mxu0 %v895_v37  ;;  %v893_v53 = vld [vmem:[%s1983_s7 + $0xe8] sm:$0xff] }
 0x129   : > { %v639_v56 = vmax.f32 %v593_v54, 0.0  ;;  %v669_v57 = vadd.f32 %v668_v52, %v638_v51  ;;  %v608_v61 = vadd.f32 %v1345_v55, %v1695_v2  ;;  %940 = vmatpush1.msra.mxu0 %v894_v38  ;;  %v899_v51 = vld [vmem:[%s1983_s7 + $0x118] sm:$0xff]  ;;  %v896_v52 = vld [vmem:[%s1983_s7 + $0x100] sm:$0xff]  ;;  %v889_v54 = vld [vmem:[%s1983_s7 + $0xc8] sm:$0xff] }
 0x12a   : > { %v602_v58 = vpop.f32.mrf.mxu0  ;;  %941 = vmatprep.subr.mxu0 %v892_v39  ;;  %v888_v55 = vld [vmem:[%s1983_s7 + $0xc0] sm:$0xff] }
 0x12b   : > { %v670_v60 = vadd.f32 %v669_v57, %v639_v56  ;;  %v603_v62 = vadd.f32 %v1695_v2, %v602_v58  ;;  %v642_v1 = vmax.f32 %v608_v61, 0.0  ;;  %v784_v2 = vld [vmem:[%s1981_s5 + $0x70] sm:$0xff]  ;;  %942 = vmatpush1.msra.mxu0 %v891_v40  ;;  %v885_v58 = vld [vmem:[%s1983_s7 + $0xa8] sm:$0xff]  ;;  %v880_v61 = vld [vmem:[%s1983_s7 + $0x80] sm:$0xff] }
 0x12c   : > { %943 = vmatprep.subr.mxu0 %v889_v54  ;;  %v890_v56 = vld [vmem:[%s1983_s7 + $0xd0] sm:$0xff] }
 0x12d   : > { %v641_v63 = vmax.f32 %v603_v62, 0.0  ;;  %v671_v0 = vadd.f32 %v670_v60, %v640_v59  ;;  %944 = vmatpush1.msra.mxu0 %v888_v55  ;;  %v886_v57 = vld [vmem:[%s1983_s7 + $0xb0] sm:$0xff]  ;;  %v883_v59 = vld [vmem:[%s1983_s7 + $0x98] sm:$0xff] }
 0x12e   : > { %945 = vmatprep.subr.mxu0 %v886_v57  ;;  %v882_v60 = vld [vmem:[%s1983_s7 + $0x90] sm:$0xff]  ;;  %v879_v62 = vld [vmem:[%s1983_s7 + $0x78] sm:$0xff] }
 0x12f   : > { %v672_v3 = vadd.f32 %v671_v0, %v641_v63  ;;  %946 = vmatpush1.msra.mxu0 %v885_v58  ;;  %v877_v63 = vld [vmem:[%s1983_s7 + $0x68] sm:$0xff]  ;;  %v887_v0 = vld [vmem:[%s1983_s7 + $0xb8] sm:$0xff] }
 0x130   : > { %947 = vmatprep.subr.mxu0 %v883_v59 }
 0x131   : > { %v673_v4 = vadd.f32 %v672_v3, %v642_v1  ;;  %948 = vmatpush1.msra.mxu0 %v882_v60  ;;  %v884_v1 = vld [vmem:[%s1983_s7 + $0xa0] sm:$0xff] }
 0x132   : > { %949 = vmatprep.subr.mxu0 %v880_v61  ;;  %v876_v3 = vld [vmem:[%s1983_s7 + $0x60] sm:$0xff] }
 0x133   : > { %v674_v5 = vrot.slane %v673_v4, 4  ;;  %950 = vmatpush1.msra.mxu0 %v879_v62 }
 0x134   : > { %951 = vmatprep.subr.mxu0 %v877_v63 }
 0x135   : > { %v675_v6 = vadd.f32 %v674_v5, %v673_v4  ;;  %v874_v4 = vld [vmem:[%s1983_s7 + $0x50] sm:$0xff]  ;;  %v881_v5 = vld [vmem:[%s1983_s7 + $0x88] sm:$0xff]  ;;  %952 = vmatpush1.msra.mxu0 %v876_v3 }
 0x136   : > { %953 = vmatprep.subr.mxu0 %v874_v4 }
 0x137   : > { %v676_v7 = vrot.slane %v675_v6, 2 }
 0x139   : > { %v677_v8 = vadd.f32 %v676_v7, %v675_v6  ;;  %v873_v6 = vld [vmem:[%s1983_s7 + $0x48] sm:$0xff]  ;;  %v871_v7 = vld [vmem:[%s1983_s7 + $0x38] sm:$0xff] }
 0x13a   : > { %954 = vmatpush1.msra.mxu0 %v873_v6 }
 0x13b   : > { %v678_v9 = vrot.slane %v677_v8, 1  ;;  %955 = vmatprep.subr.mxu0 %v871_v7 }
 0x13d   : > { %v679_v10 = vadd.f32 %v678_v9, %v677_v8  ;;  %v878_v8 = vld [vmem:[%s1983_s7 + $0x70] sm:$0xff] }
 0x13e   : > { %v870_v9 = vld [vmem:[%s1983_s7 + $0x30] sm:$0xff] }
 0x13f   : > { %v1729_v11 = vmul.f32 0.00390625, %v679_v10  ;;  %v868_v10 = vld [vmem:[%s1983_s7 + $0x20] sm:$0xff]  ;;  %956 = vmatpush1.msra.mxu0 %v870_v9 }
 0x140   : > { %957 = vmatprep.subr.mxu0 %v868_v10 }
 0x141   : > { %1379 = vmatmul.mubr.f32.vlgmr.msra.gmra.mxu1 %v1729_v11 }
 0x142   : > { %1382 = vmatpush3.msra.mxu1 %v785_v12  ;;  %1413 = vmatprep.mubr.msk.f32.mxu1 %vm1476_vm0, %v1475_v48  ;;  %v875_v12 = vld [vmem:[%s1983_s7 + $0x58] sm:$0xff] }
 0x143   : > { %1383 = vmatprep.subr.mxu1 %v1475_v48 }
 0x144   : > { %1384 = vmatpush3.msra.mxu1 %v784_v2  ;;  %v867_v2 = vld [vmem:[%s1983_s7 + $0x18] sm:$0xff] }
 0x145   : > { %1385 = vmatprep.subr.mxu1 %v1475_v48  ;;  %958 = vmatpush1.msra.mxu0 %v867_v2 }
 0x146   : > { %1386 = vmatpush3.msra.mxu1 %v783_v13  ;;  %v865_v13 = vld [vmem:[%s1983_s7 + $0x8] sm:$0xff] }
 0x147   : > { %1387 = vmatprep.subr.mxu1 %v1475_v48  ;;  %959 = vmatprep.subr.mxu0 %v865_v13 }
 0x148   : > { %1388 = vmatpush3.msra.mxu1 %v782_v14  ;;  %v872_v14 = vld [vmem:[%s1983_s7 + $0x40] sm:$0xff] }
 0x149   : > { %1389 = vmatprep.subr.mxu1 %v1475_v48 }
 0x14a   : > { %1390 = vmatpush3.msra.mxu1 %v781_v15  ;;  %v864_v15 = vld [vmem:[%s1983_s7] sm:$0xff] }
 0x14b   : > { %1391 = vmatprep.subr.mxu1 %v1475_v48  ;;  %960 = vmatpush1.msra.mxu0 %v864_v15 }
 0x14c   : > { %1392 = vmatpush3.msra.mxu1 %v780_v16  ;;  %v869_v16 = vld [vmem:[%s1983_s7 + $0x28] sm:$0xff] }
 0x14d   : > { %1393 = vmatprep.subr.mxu1 %v1475_v48 }
 0x14e   : > { %1394 = vmatpush3.msra.mxu1 %v779_v17  ;;  %v866_v17 = vld [vmem:[%s1983_s7 + $0x10] sm:$0xff] }
 0x14f   : > { %1395 = vmatprep.subr.mxu1 %v1475_v48 }
 0x150   : > { %1396 = vmatpush3.msra.mxu1 %v778_v18  ;;  %v786_v18 = vld [vmem:[%s1982_s6] sm:$0x1] }
 0x151   : > { %1397 = vmatprep.subr.mxu1 %v1475_v48 }
 0x152   : > { %1398 = vmatpush3.msra.mxu1 %v777_v19 }
 0x153   : > { %1399 = vmatprep.subr.mxu1 %v1475_v48 }
 0x154   : > { %1400 = vmatpush3.msra.mxu1 %v776_v20 }
 0x155   : > { %1401 = vmatprep.subr.mxu1 %v1475_v48 }
 0x156   : > { %1402 = vmatpush3.msra.mxu1 %v775_v21 }
 0x157   : > { %1403 = vmatprep.subr.mxu1 %v1475_v48 }
 0x158   : > { %1404 = vmatpush3.msra.mxu1 %v774_v22 }
 0x159   : > { %1405 = vmatprep.subr.mxu1 %v1475_v48 }
 0x15a   : > { %1406 = vmatpush3.msra.mxu1 %v773_v23 }
 0x15b   : > { %1407 = vmatprep.subr.mxu1 %v1475_v48 }
 0x15c   : > { %1408 = vmatpush3.msra.mxu1 %v772_v24 }
 0x15d   : > { %1409 = vmatprep.subr.mxu1 %v1475_v48 }
 0x15e   : > { %1410 = vmatpush3.msra.mxu1 %v771_v25 }
 0x15f   : > { %1411 = vmatprep.subr.mxu1 %v1475_v48 }
 0x160   : > { %1412 = vmatpush3.msra.mxu1 %v770_v26 }
 0x161   : > { %1416 = vmatprep.subr.mxu1 %v1475_v48 }
 0x201   : > { %v765_v42 = vpop.f32.mrf.mxu1 }
 0x202   : > { %v766_v43 = vadd.f32 %v765_v42, %v698_v41 }
 0x203   : > { %v1380_v44 = vpop.f32.mrf.mxu1 }
 0x204   : > { %v769_v45 = vmax.f32 %v766_v43, 0.0 }
 0x206   : > { %1414 = vmatmul.mubr.f32.vlgmr.msra.gmra.mxu1 %v769_v45 }
 0x207   : > { %1448 = vmatprep.mubr.msk.f32.mxu1 %vm1476_vm0, %v1475_v48  ;;  %1417 = vmatpush3.msra.mxu1 %v911_v46 }
 0x208   : > { %1418 = vmatprep.subr.mxu1 %v1475_v48 }
 0x209   : > { %1419 = vmatpush3.msra.mxu1 %v908_v47 }
 0x20a   : > { %1420 = vmatprep.subr.mxu1 %v1475_v48 }
 0x20b   : > { %1421 = vmatpush3.msra.mxu1 %v905_v49 }
 0x20c   : > { %1422 = vmatprep.subr.mxu1 %v1475_v48 }
 0x20d   : > { %1423 = vmatpush3.msra.mxu1 %v902_v50 }
 0x20e   : > { %1424 = vmatprep.subr.mxu1 %v1475_v48 }
 0x20f   : > { %1425 = vmatpush3.msra.mxu1 %v899_v51 }
 0x210   : > { %1426 = vmatprep.subr.mxu1 %v1475_v48 }
 0x211   : > { %1427 = vmatpush3.msra.mxu1 %v896_v52 }
 0x212   : > { %1428 = vmatprep.subr.mxu1 %v1475_v48 }
 0x213   : > { %1429 = vmatpush3.msra.mxu1 %v893_v53 }
 0x214   : > { %1430 = vmatprep.subr.mxu1 %v1475_v48 }
 0x215   : > { %1431 = vmatpush3.msra.mxu1 %v890_v56 }
 0x216   : > { %1432 = vmatprep.subr.mxu1 %v1475_v48 }
 0x217   : > { %1433 = vmatpush3.msra.mxu1 %v887_v0 }
 0x218   : > { %1434 = vmatprep.subr.mxu1 %v1475_v48 }
 0x219   : > { %1435 = vmatpush3.msra.mxu1 %v884_v1 }
 0x21a   : > { %1436 = vmatprep.subr.mxu1 %v1475_v48 }
 0x21b   : > { %1437 = vmatpush3.msra.mxu1 %v881_v5 }
 0x21c   : > { %1438 = vmatprep.subr.mxu1 %v1475_v48 }
 0x21d   : > { %1439 = vmatpush3.msra.mxu1 %v878_v8 }
 0x21e   : > { %1440 = vmatprep.subr.mxu1 %v1475_v48 }
 0x21f   : > { %1441 = vmatpush3.msra.mxu1 %v875_v12 }
 0x220   : > { %1442 = vmatprep.subr.mxu1 %v1475_v48 }
 0x221   : > { %1443 = vmatpush3.msra.mxu1 %v872_v14 }
 0x222   : > { %1444 = vmatprep.subr.mxu1 %v1475_v48 }
 0x223   : > { %1445 = vmatpush3.msra.mxu1 %v869_v16 }
 0x224   : > { %1446 = vmatprep.subr.mxu1 %v1475_v48  ;;  %v915_v48 = vshrl.u32 %v914_v27, 7 }
 0x225   : > { %1447 = vmatpush3.msra.mxu1 %v866_v17 }
 0x226   : > { %v916_v28 = vsub.s32 0, %v915_v48  ;;  %v924_v29 = vsub.s32 2, %v915_v48  ;;  %v920_v32 = vsub.s32 1, %v915_v48  ;;  %v1079_v43 = vsub.s32 %v1076_v36, %v915_v48 }
 0x228   : > { %v917_v34 = vrot.slane %v912_v33, %v916_v28  ;;  %v925_v35 = vrot.slane %v912_v33, %v924_v29  ;;  %v921_v37 = vrot.slane %v912_v33, %v920_v32 }
 0x2c6   : > { %v853_v19 = vpop.f32.mrf.mxu1 }
 0x2c7   : > { %v854_v20 = vadd.f32 %v853_v19, %v786_v18 }
 0x2c8   : > { %v1415_v21 = vpop.f32.mrf.mxu1 }
 0x2c9   : > { %v1163_v22 = vmul.f32 -1.442695, %v854_v20 }
 0x2cb   : > { %1463 = vpow2.f32 %v1163_v22 }
 0x2d8   : > { %v1464_v23 = vpop.eup %1463 }
 0x2d9   : > { %v860_v24 = vadd.f32 1.0, %v1464_v23 }
 0x2db   : > { %1465 = vrcp.f32 %v860_v24 }
 0x2e8   : > { %v1466_v25 = vpop.eup %1465 }
 0x2e9   : > { %v863_v26 = vmul.f32 %v1466_v25, %v1729_v11 }
 0x2eb   : > { %994 = vmatmul.mubr.f32.vlgmr.msra.gmra.mxu0 %v863_v26  ;;  %1449 = vmatmul.mubr.f32.vlgmr.msra.gmra.mxu1 %v863_v26 }
 0x3ab   : > { %v995_v38 = vpop.f32.mrf.mxu0  ;;  %v1066_v11 = vpop.f32.mrf.mxu1 }
 0x3ac   : > { %v996_v41 = vadd.f32 %v995_v38, %v917_v34  ;;  %v1067_v42 = vadd.f32 %v1066_v11, %v925_v35 }
 0x3ad   : > { %v997_v39 = vpop.f32.mrf.mxu0  ;;  %v1450_v40 = vpop.f32.mrf.mxu1 }
 0x3ae   : > { %v998_v44 = vadd.f32 %v997_v39, %v921_v37  ;;  %v1087_v46 = vrot.slane %v1067_v42, %v1079_v43 }
 0x3b0   : > { %v1073_v45 = vcombine.low %v996_v41, %v998_v44 }
 0x3b2   : > { %v1080_v47 = vrot.slane %v1073_v45, %v1079_v43 }
 0x3b4   : > { %v1088_v49 = vcombine.low %v1080_v47, %v1087_v46 }
 0x3b6   : > { %v1095_v50 = vrot.slane %v1088_v49, %v1079_v43 }
 0x3b8   : > { %1101 = vst.msk [vmem:[%s330_s29] sm:$0x7] %vm1099_vm1, %v1095_v50 }
 0x3b9 PF: > { %s19_s30 = sadd.s32 1, %s1473_s30  }
 0x3ba   : > { %p16_p4 = scmp.ge.s32.totalorder %s19_s30, 4  }
 0x3bc   :  { %18 = sbr.rel (!%p16_p4) target bundleno = 1 (0x1), region = 86 }

</bundles_post_ra>
